<compile_context>
chip_gen: v7x
topology: tpu7x:2x2x1
jax: 0.10.0
libtpu: 0.0.40
codegen_flags: <defaults>
</compile_context>

<pallas_src>
import functools

import jax
import jax.numpy as jnp
import numpy as np
from jax.experimental import pallas as pl
from jax.experimental.pallas import tpu as pltpu


def _round_up(n, m):
    return ((n + m - 1) // m) * m


def _score_model_kernel(xt_ref, w1_ref, b1_ref, w2_ref, b2_ref, w3_ref, b3_ref, et_ref,
                        score_ref, trace_ref):
    xt = xt_ref[...]                        # (D,  Bt)   matmul dtype
    w1 = w1_ref[...]                        # (H1, D)    matmul dtype
    w2 = w2_ref[...]                        # (H2, H1)   matmul dtype
    w3 = w3_ref[...]                        # (D,  H2)   matmul dtype
    mdt = w1.dtype

    # ---- forward pass, feature-major (batch on lanes), f32 accumulate ----
    z1 = jnp.dot(w1, xt, preferred_element_type=jnp.float32) + b1_ref[...]        # (H1, Bt)
    a1 = jnp.tanh(z1)
    z2 = jnp.dot(w2, a1.astype(mdt), preferred_element_type=jnp.float32) + b2_ref[...]
    a2 = jnp.tanh(z2)                                                              # (H2, Bt)
    score = jnp.dot(w3, a2.astype(mdt), preferred_element_type=jnp.float32) + b3_ref[...]
    score_ref[...] = score.astype(score_ref.dtype)                                 # (D, Bt)

    # ---- exact Jacobian trace ----
    # tr_b = d1_b @ E @ d2_b^T with E = W2^T * (W1 @ W3) precomputed in the wrapper.
    # In column (feature, batch) layout: tr[b] = sum_h2 (E^T @ D1)[h2, b] * D2[h2, b].
    d1 = 1.0 - a1 * a1                                                             # (H1, Bt) f32
    d2 = 1.0 - a2 * a2                                                             # (H2, Bt) f32
    t = jnp.dot(et_ref[...], d1, preferred_element_type=jnp.float32)               # (H2, Bt)
    trace_ref[...] = jnp.sum(t * d2, axis=0, keepdims=True)                        # (1,  Bt)


@functools.partial(jax.jit, static_argnames=("block_b", "matmul_dtype"))
def score_model_forward(x, params, *, block_b=128, matmul_dtype=jnp.float32):
    """Pallas ScoreModel.forward. Returns (score (B, D), jacobian_trace (B,))."""
    w1, b1, w2, b2, w3, b3 = params
    B, D = x.shape
    H1 = w1.shape[0]
    H2 = w2.shape[0]

    # Batch-independent trace prefactor, hoisted out of the kernel.
    # E = W2^T * (W1 @ W3)  (H1, H2);  pass E^T = W2 * (W1 @ W3)^T so no in-kernel transpose.
    et = (w2 * (w1 @ w3).T).astype(jnp.float32)                                    # (H2, H1)

    # Batch on the lane axis, padded to a lane-dense multiple of the batch tile.
    bt = min(block_b, _round_up(B, 128))
    bt = _round_up(bt, 128)
    Bp = _round_up(B, bt)
    xt = jnp.zeros((D, Bp), matmul_dtype).at[:, :B].set(x.T.astype(matmul_dtype))

    w1m = w1.astype(matmul_dtype)
    w2m = w2.astype(matmul_dtype)
    w3m = w3.astype(matmul_dtype)
    b1c = b1.reshape(H1, 1).astype(jnp.float32)
    b2c = b2.reshape(H2, 1).astype(jnp.float32)
    b3c = b3.reshape(D, 1).astype(jnp.float32)

    def resident(shape):  # weight-like operands: constant block -> stay resident in VMEM
        return pl.BlockSpec(shape, lambda i: (0, 0))

    score_t, trace = pl.pallas_call(
        _score_model_kernel,
        out_shape=(jax.ShapeDtypeStruct((D, Bp), jnp.float32),
                   jax.ShapeDtypeStruct((1, Bp), jnp.float32)),
        grid=(Bp // bt,),
        in_specs=[
            pl.BlockSpec((D, bt), lambda i: (0, i)),   # x tile streamed over the batch
            resident((H1, D)), resident((H1, 1)),      # W1, b1
            resident((H2, H1)), resident((H2, 1)),     # W2, b2
            resident((D, H2)), resident((D, 1)),       # W3, b3
            resident((H2, H1)),                        # E^T
        ],
        out_specs=(pl.BlockSpec((D, bt), lambda i: (0, i)),
                   pl.BlockSpec((1, bt), lambda i: (0, i))),
        compiler_params=pltpu.CompilerParams(dimension_semantics=("parallel",)),
    )(xt, w1m, b1c, w2m, b2c, w3m, b3c, et)

    # Transpose / squeeze back outside the kernel (lane-dense stores stay inside).
    return score_t[:, :B].T, trace[0, :B]


def init_params(key, input_dim, hidden_dims):
    """Deterministic PyTorch-Linear-style init: U(-1/sqrt(fan_in), 1/sqrt(fan_in))."""
    dims = [input_dim] + hidden_dims + [input_dim]
    params = []
    for i in range(len(dims) - 1):
        fan_in, fan_out = dims[i], dims[i + 1]
        key, kw, kb = jax.random.split(key, 3)
        bound = 1.0 / np.sqrt(fan_in)
        w = jax.random.uniform(kw, (fan_out, fan_in), jnp.float32, -bound, bound)
        b = jax.random.uniform(kb, (fan_out,), jnp.float32, -bound, bound)
        params += [w, b]
    return tuple(params)


def score_model_reference(x, params):
    """Pure-JAX reference matching the PyTorch semantics (exact Jacobian trace)."""
    w1, b1, w2, b2, w3, b3 = params
    a1 = jnp.tanh(x @ w1.T + b1)
    a2 = jnp.tanh(a1 @ w2.T + b2)
    score = a2 @ w3.T + b3
    d1 = 1.0 - a1 ** 2
    d2 = 1.0 - a2 ** 2
    # J_b = W3 diag(d2_b) W2 diag(d1_b) W1
    j = jnp.einsum('ok,bk,kh,bh,hd->bod', w3, d2, w2, d1, w1)
    trace = jnp.trace(j, axis1=1, axis2=2)
    return score, trace


if __name__ == "__main__":
    # ScoreModel(input_dim=8, hidden_dims=[32, 32]); batch of 256 exercises a 2-step grid.
    B, D, H1, H2 = 256, 8, 32, 32

    key = jax.random.PRNGKey(0)
    key, kx = jax.random.split(key)
    x = jax.random.normal(kx, (B, D), jnp.float32)
    params = init_params(key, D, [H1, H2])

    score_ref, trace_ref = score_model_reference(x, params)

    # f32 matmul path (exact).
    score, trace = score_model_forward(x, params, block_b=128, matmul_dtype=jnp.float32)
    jax.block_until_ready((score, trace))
    np.testing.assert_allclose(np.asarray(score), np.asarray(score_ref), atol=1e-5, rtol=1e-5)
    np.testing.assert_allclose(np.asarray(trace), np.asarray(trace_ref), atol=1e-4, rtol=1e-4)

    # bf16 matmul path (v6e/v7x native MXU dtype); f32 accumulate -> loose tolerances.
    score_bf, trace_bf = score_model_forward(x, params, block_b=128,
                                             matmul_dtype=jnp.bfloat16)
    jax.block_until_ready((score_bf, trace_bf))
    np.testing.assert_allclose(np.asarray(score_bf), np.asarray(score_ref), atol=2e-1, rtol=2e-1)
    np.testing.assert_allclose(np.asarray(trace_bf), np.asarray(trace_ref), atol=3e-1, rtol=3e-1)

    # TODO(synk): hutchinson_trace path (hutchinson_samples > 0) is not exercised by the
    # default forward (hutchinson_samples=0) and is not implemented here.
    print("KERNEL_OK")
</pallas_src>

<mosaic_0001>
module attributes {stable_mosaic.version = 11 : i64} {
  func.func @_score_model_kernel(%arg0: i32, %arg1: memref<8x128xf32, #tpu.memory_space<vmem>>, %arg2: memref<32x8xf32, #tpu.memory_space<vmem>>, %arg3: memref<32x1xf32, #tpu.memory_space<vmem>>, %arg4: memref<32x32xf32, #tpu.memory_space<vmem>>, %arg5: memref<32x1xf32, #tpu.memory_space<vmem>>, %arg6: memref<8x32xf32, #tpu.memory_space<vmem>>, %arg7: memref<8x1xf32, #tpu.memory_space<vmem>>, %arg8: memref<32x32xf32, #tpu.memory_space<vmem>>, %arg9: memref<8x128xf32, #tpu.memory_space<vmem>>, %arg10: memref<1x128xf32, #tpu.memory_space<vmem>>) attributes {dimension_semantics = [#tpu.dimension_semantics<parallel>], iteration_bounds = array<i64: 2>, scalar_prefetch = 0 : i64, scratch_operands = 0 : i64, tpu.core_type = #tpu.core_type<tc>, window_params = [{transform_indices = @transform_0, window_bounds = array<i64: 8, 128>}, {pipeline_mode = #tpu.pipeline_mode<synchronous>, transform_indices = @transform_1, window_bounds = array<i64: 32, 8>}, {pipeline_mode = #tpu.pipeline_mode<synchronous>, transform_indices = @transform_2, window_bounds = array<i64: 32, 1>}, {pipeline_mode = #tpu.pipeline_mode<synchronous>, transform_indices = @transform_3, window_bounds = array<i64: 32, 32>}, {pipeline_mode = #tpu.pipeline_mode<synchronous>, transform_indices = @transform_4, window_bounds = array<i64: 32, 1>}, {pipeline_mode = #tpu.pipeline_mode<synchronous>, transform_indices = @transform_5, window_bounds = array<i64: 8, 32>}, {pipeline_mode = #tpu.pipeline_mode<synchronous>, transform_indices = @transform_6, window_bounds = array<i64: 8, 1>}, {pipeline_mode = #tpu.pipeline_mode<synchronous>, transform_indices = @transform_7, window_bounds = array<i64: 32, 32>}, {transform_indices = @transform_8, window_bounds = array<i64: 8, 128>}, {transform_indices = @transform_9, window_bounds = array<i64: 1, 128>}]} {
    %c0 = arith.constant 0 : index
    %c0_0 = arith.constant 0 : index
    %0 = vector.load %arg1[%c0, %c0_0] : memref<8x128xf32, #tpu.memory_space<vmem>>, vector<8x128xf32>
    %c0_1 = arith.constant 0 : index
    %c0_2 = arith.constant 0 : index
    %1 = vector.load %arg2[%c0_1, %c0_2] : memref<32x8xf32, #tpu.memory_space<vmem>>, vector<32x8xf32>
    %c0_3 = arith.constant 0 : index
    %c0_4 = arith.constant 0 : index
    %2 = vector.load %arg4[%c0_3, %c0_4] : memref<32x32xf32, #tpu.memory_space<vmem>>, vector<32x32xf32>
    %c0_5 = arith.constant 0 : index
    %c0_6 = arith.constant 0 : index
    %3 = vector.load %arg6[%c0_5, %c0_6] : memref<8x32xf32, #tpu.memory_space<vmem>>, vector<8x32xf32>
    %cst = arith.constant dense<0.000000e+00> : vector<32x128xf32>
    %4 = tpu.matmul %1, %0, %cst {dimension_numbers = #tpu.dot_dimension_numbers<[1], [0], [0], [1], [0, 0, 1, 1], [], []>} : vector<32x8xf32>, vector<8x128xf32>, vector<32x128xf32> -> vector<32x128xf32>
    %c0_7 = arith.constant 0 : index
    %c0_8 = arith.constant 0 : index
    %5 = vector.load %arg3[%c0_7, %c0_8] : memref<32x1xf32, #tpu.memory_space<vmem>>, vector<32x1xf32>
    %6 = vector.broadcast %5 : vector<32x1xf32> to vector<32x128xf32>
    %7 = arith.addf %4, %6 : vector<32x128xf32>
    %8 = math.tanh %7 : vector<32x128xf32>
    %cst_9 = arith.constant dense<0.000000e+00> : vector<32x128xf32>
    %9 = tpu.matmul %2, %8, %cst_9 {dimension_numbers = #tpu.dot_dimension_numbers<[1], [0], [0], [1], [0, 0, 1, 1], [], []>} : vector<32x32xf32>, vector<32x128xf32>, vector<32x128xf32> -> vector<32x128xf32>
    %c0_10 = arith.constant 0 : index
    %c0_11 = arith.constant 0 : index
    %10 = vector.load %arg5[%c0_10, %c0_11] : memref<32x1xf32, #tpu.memory_space<vmem>>, vector<32x1xf32>
    %11 = vector.broadcast %10 : vector<32x1xf32> to vector<32x128xf32>
    %12 = arith.addf %9, %11 : vector<32x128xf32>
    %13 = math.tanh %12 : vector<32x128xf32>
    %cst_12 = arith.constant dense<0.000000e+00> : vector<8x128xf32>
    %14 = tpu.matmul %3, %13, %cst_12 {dimension_numbers = #tpu.dot_dimension_numbers<[1], [0], [0], [1], [0, 0, 1, 1], [], []>} : vector<8x32xf32>, vector<32x128xf32>, vector<8x128xf32> -> vector<8x128xf32>
    %c0_13 = arith.constant 0 : index
    %c0_14 = arith.constant 0 : index
    %15 = vector.load %arg7[%c0_13, %c0_14] : memref<8x1xf32, #tpu.memory_space<vmem>>, vector<8x1xf32>
    %16 = vector.broadcast %15 : vector<8x1xf32> to vector<8x128xf32>
    %17 = arith.addf %14, %16 : vector<8x128xf32>
    %c0_15 = arith.constant 0 : index
    %c0_16 = arith.constant 0 : index
    %18 = vector.load %arg9[%c0_15, %c0_16] : memref<8x128xf32, #tpu.memory_space<vmem>>, vector<8x128xf32>
    tpu.vector_store %arg9[%c0_15, %c0_16], %17 {strides = array<i32>} : memref<8x128xf32, #tpu.memory_space<vmem>>, vector<8x128xf32>,
    %19 = arith.mulf %8, %8 : vector<32x128xf32>
    %cst_17 = arith.constant 1.000000e+00 : f32
    %20 = vector.broadcast %cst_17 : f32 to vector<32x128xf32>
    %21 = arith.subf %20, %19 : vector<32x128xf32>
    %22 = arith.mulf %13, %13 : vector<32x128xf32>
    %cst_18 = arith.constant 1.000000e+00 : f32
    %23 = vector.broadcast %cst_18 : f32 to vector<32x128xf32>
    %24 = arith.subf %23, %22 : vector<32x128xf32>
    %c0_19 = arith.constant 0 : index
    %c0_20 = arith.constant 0 : index
    %25 = vector.load %arg8[%c0_19, %c0_20] : memref<32x32xf32, #tpu.memory_space<vmem>>, vector<32x32xf32>
    %cst_21 = arith.constant dense<0.000000e+00> : vector<32x128xf32>
    %26 = tpu.matmul %25, %21, %cst_21 {dimension_numbers = #tpu.dot_dimension_numbers<[1], [0], [0], [1], [0, 0, 1, 1], [], []>} : vector<32x32xf32>, vector<32x128xf32>, vector<32x128xf32> -> vector<32x128xf32>
    %27 = arith.mulf %26, %24 : vector<32x128xf32>
    %cst_22 = arith.constant dense<0.000000e+00> : vector<128xf32>
    %28 = vector.multi_reduction <add>, %27, %cst_22 [0] : vector<32x128xf32> to vector<128xf32>
    %29 = vector.shape_cast %28 : vector<128xf32> to vector<1x128xf32>
    %c0_23 = arith.constant 0 : index
    %c0_24 = arith.constant 0 : index
    %30 = vector.load %arg10[%c0_23, %c0_24] : memref<1x128xf32, #tpu.memory_space<vmem>>, vector<1x128xf32>
    tpu.vector_store %arg10[%c0_23, %c0_24], %29 {strides = array<i32>} : memref<1x128xf32, #tpu.memory_space<vmem>>, vector<1x128xf32>,
    return
  }
  func.func @transform_0(%arg0: i32) -> (i32, i32) {
    %c0_i32 = arith.constant 0 : i32
    %c0_i32_0 = arith.constant 0 : i32
    return %c0_i32, %arg0 : i32, i32
  }
  func.func @transform_1(%arg0: i32) -> (i32, i32) {
    %c0_i32 = arith.constant 0 : i32
    %c0_i32_0 = arith.constant 0 : i32
    %c0_i32_1 = arith.constant 0 : i32
    return %c0_i32, %c0_i32_0 : i32, i32
  }
  func.func @transform_2(%arg0: i32) -> (i32, i32) {
    %c0_i32 = arith.constant 0 : i32
    %c0_i32_0 = arith.constant 0 : i32
    %c0_i32_1 = arith.constant 0 : i32
    return %c0_i32, %c0_i32_0 : i32, i32
  }
  func.func @transform_3(%arg0: i32) -> (i32, i32) {
    %c0_i32 = arith.constant 0 : i32
    %c0_i32_0 = arith.constant 0 : i32
    %c0_i32_1 = arith.constant 0 : i32
    return %c0_i32, %c0_i32_0 : i32, i32
  }
  func.func @transform_4(%arg0: i32) -> (i32, i32) {
    %c0_i32 = arith.constant 0 : i32
    %c0_i32_0 = arith.constant 0 : i32
    %c0_i32_1 = arith.constant 0 : i32
    return %c0_i32, %c0_i32_0 : i32, i32
  }
  func.func @transform_5(%arg0: i32) -> (i32, i32) {
    %c0_i32 = arith.constant 0 : i32
    %c0_i32_0 = arith.constant 0 : i32
    %c0_i32_1 = arith.constant 0 : i32
    return %c0_i32, %c0_i32_0 : i32, i32
  }
  func.func @transform_6(%arg0: i32) -> (i32, i32) {
    %c0_i32 = arith.constant 0 : i32
    %c0_i32_0 = arith.constant 0 : i32
    %c0_i32_1 = arith.constant 0 : i32
    return %c0_i32, %c0_i32_0 : i32, i32
  }
  func.func @transform_7(%arg0: i32) -> (i32, i32) {
    %c0_i32 = arith.constant 0 : i32
    %c0_i32_0 = arith.constant 0 : i32
    %c0_i32_1 = arith.constant 0 : i32
    return %c0_i32, %c0_i32_0 : i32, i32
  }
  func.func @transform_8(%arg0: i32) -> (i32, i32) {
    %c0_i32 = arith.constant 0 : i32
    %c0_i32_0 = arith.constant 0 : i32
    return %c0_i32, %arg0 : i32, i32
  }
  func.func @transform_9(%arg0: i32) -> (i32, i32) {
    %c0_i32 = arith.constant 0 : i32
    %c0_i32_0 = arith.constant 0 : i32
    return %c0_i32, %arg0 : i32, i32
  }
}

</mosaic_0001>

<bundles_post_ra>
// kernel: score_model_forward.1
= control target key start
LH: loop header
LB: loop body
LE: loop exit
PB: predicated region body
PF: predicated region fallthrough
CT: control target
= control target key end

     0   :  { %15 = vsyncpa [#allocation3], 0  ;;  %s1474_s0 = inlined_call_operand.vmem [shape: f32[8,256], index: 0, kind: input, shape index: {}]   ;;  %s1475_s1 = inlined_call_operand.vmem [shape: f32[32,8], index: 1, kind: input, shape index: {}]   ;;  %s1476_s2 = inlined_call_operand.vmem [shape: f32[32,1], index: 2, kind: input, shape index: {}]   ;;  %s1477_s3 = inlined_call_operand.vmem [shape: f32[32,32], index: 3, kind: input, shape index: {}]   ;;  %s1478_s4 = inlined_call_operand.vmem [shape: f32[32,1], index: 4, kind: input, shape index: {}]   ;;  %s1479_s5 = inlined_call_operand.vmem [shape: f32[8,32], index: 5, kind: input, shape index: {}]   ;;  %s1480_s6 = inlined_call_operand.vmem [shape: f32[8,1], index: 6, kind: input, shape index: {}]   ;;  %s1481_s7 = inlined_call_operand.vmem [shape: f32[32,32], index: 7, kind: input, shape index: {}]   ;;  %s1482_s8 = inlined_call_operand.hbm [shape: f32[8,256], index: 8, kind: output, shape index: {0}]   ;;  %s1483_s9 = inlined_call_operand.hbm [shape: f32[1,256], index: 9, kind: output, shape index: {1}]  }
   0x1   :  { %17 = vsyncpa [#allocation3 + $0x1], 0 }
   0x2   :  { %18 = vsyncpa [#allocation5], 0 }
   0x3   :  { %20 = vsyncpa [#allocation5 + $0x1], 0  ;;  %s1266_s30 = smov 0   ;;  %s1268_s10 = smov 0  }
   0x4   :  { %s1270_s11 = smov 0   ;;  %s1272_s12 = smov 0  }
   0x5 LB: > { %s1287_s13 = sadd.s32 4294967295, %s1208_s12   ;;  %s929_s14 = sadd.s32 4294967294, %s1208_s12   ;;  %s1208_s12 = sphi %s1272_s12, %s1491_s12   ;;  %s1204_s11 = sphi %s1270_s11, %s1490_s11   ;;  %s1200_s10 = sphi %s1268_s10, %s1489_s10   ;;  %s1196_s30 = sphi %s1266_s30, %s1488_s30  }
   0x6   : > { %s1291_s15 = sadd.s32 1, %s1208_s12   ;;  %s206_s16 = sadd.s32 1, %s1204_s11 }
   0x7   : > { %s203_s17 = ssub.s32 %s1208_s12, %s1291_s15  ;;  %p216_p0 = scmp.ne.s32.totalorder %s1204_s11, %s1200_s10 }
   0x8   : > { %p204_p1 = scmp.eq.s32.totalorder %s203_s17, 0  ;;  %p217_p2 = scmp.eq.s32.totalorder %s1287_s13, 1 }
   0x9   : > { %p222_p3 = scmp.ne.s32.totalorder %s1200_s10, %s1196_s30  ;;  %p223_p4 = scmp.eq.s32.totalorder %s929_s14, 1 }
   0xa   : > { %s1302_s18 = scalar_select %p204_p1, %s1204_s11, %s206_s16  }
   0xb   : > { %p1304_p5 = por %p217_p2, %p216_p0  ;;  %p1308_p6 = por %p223_p4, %p222_p3 }
   0xc   : > { %1484 = sst [smem:[#allocation8_spill]] %s1302_s18  ;;  %p932_p7 = scmp.ge.s32.totalorder %s1208_s12, 1 }
   0xd   : > { %p295_p8 = scmp.lt.s32.totalorder %s1208_s12, 3 }
   0xf   : > { %p296_p9 = pnand %p932_p7, %p295_p8 }
  0x10   : > { %p334_p10 = scmp.lt.s32.totalorder (!%p296_p9), %s1287_s13, 1  ;;  %v339_v0 = vld [vmem:[%s1475_s1] sm:$0xff] (!%p296_p9)  ;;  %vm372_vm0 = vcmask (!%p296_p9), 64512   ;;  %v1210_v1 = vmov (!%p296_p9), 0   ;;  %v350_v3 = vld [vmem:[%s1476_s2 + $0x10] sm:$0xff] (!%p296_p9)  ;;  %v349_v4 = vld [vmem:[%s1476_s2 + $0x8] sm:$0xff] (!%p296_p9) }
  0x11   : > { %299 = sbr.rel (%p296_p9) target bundleno = 730 (0x2da), region = 52  ;;  %981 = vmatprep.mubr.msk.f32.mxu1 (!%p296_p9), %vm372_vm0, %v339_v0  ;;  %1096 = vset.pattern.permute.xlu0 (!%p296_p9), %v1210_v1  ;;  %v348_v2 = vld [vmem:[%s1476_s2] sm:$0xff] (!%p296_p9)  ;;  %v351_v5 = vld [vmem:[%s1476_s2 + $0x18] sm:$0xff] (!%p296_p9)  ;;  %v340_v7 = vld [vmem:[%s1475_s1 + $0x8] sm:$0xff] (!%p296_p9)  ;;  %vm498_vm1 = vcmask (!%p296_p9), 261120   ;;  %v1211_v51 = vmov (!%p296_p9), 0.0|0.0  }
  0x12   : > { %354 = vperm.xlu0 (!%p296_p9), %1096, %v348_v2   ;;  %1097 = vset.pattern.permute.xlu1 (!%p296_p9), %v1210_v1  ;;  %v341_v8 = vld [vmem:[%s1475_s1 + $0x10] sm:$0xff] (!%p296_p9)  ;;  %v474_v9 = vld [vmem:[%s1478_s4] sm:$0xff] (!%p296_p9)  ;;  %v475_v10 = vld [vmem:[%s1478_s4 + $0x8] sm:$0xff] (!%p296_p9)  ;;  %vm1212_vm2 = vmmov (!%p296_p9), 0   ;;  %v1213_v52 = vmov (!%p296_p9), 0.0   ;;  %s1399_s18 = sand.u32 (!%p296_p9), 1, %s1200_s10  }
  0x13   : > { %364 = vperm.xlu1 (!%p296_p9), %1097, %v350_v3   ;;  %v342_v11 = vld [vmem:[%s1475_s1 + $0x18] sm:$0xff] (!%p296_p9)  ;;  %v476_v12 = vld [vmem:[%s1478_s4 + $0x10] sm:$0xff] (!%p296_p9)  ;;  %v600_v14 = vld [vmem:[%s1480_s6] sm:$0xff] (!%p296_p9)  ;;  %s950_s17 = sshll.u32 (!%p296_p9), %s1287_s13, 4  ;;  %s817_s26 = scalar_lea.sflag (!%p296_p9), [#allocation5], %s1399_s18 }
  0x14   : > { %v477_v13 = vld [vmem:[%s1478_s4 + $0x18] sm:$0xff] (!%p296_p9)  ;;  %v343_v15 = vld [vmem:[%s1477_s3] sm:$0xff] (!%p296_p9)  ;;  %v344_v44 = vld [vmem:[%s1477_s3 + $0x8] sm:$0xff] (!%p296_p9)  ;;  %s1406_s24 = scalar_lea.hbm (!%p296_p9), %s1483_s9, %s950_s17 }
  0x15   : > { %995 = vmatprep.mubr.msk.f32.mxu0 (!%p296_p9), %vm498_vm1, %v343_v15  ;;  %v696_v16 = vld [vmem:[%s1481_s7] sm:$0xff] (!%p296_p9)  ;;  %v345_v46 = vld [vmem:[%s1477_s3 + $0x10] sm:$0xff] (!%p296_p9)  ;;  %v346_v47 = vld [vmem:[%s1477_s3 + $0x18] sm:$0xff] (!%p296_p9) }
  0x16   : > { %359 = vperm.xlu0 (!%p296_p9), %1096, %v349_v4   ;;  %v697_v48 = vld [vmem:[%s1481_s7 + $0x8] sm:$0xff] (!%p296_p9)  ;;  %v698_v49 = vld [vmem:[%s1481_s7 + $0x10] sm:$0xff] (!%p296_p9)  ;;  %v699_v50 = vld [vmem:[%s1481_s7 + $0x18] sm:$0xff] (!%p296_p9) }
  0x17   : > { %369 = vperm.xlu1 (!%p296_p9), %1097, %v351_v5  }
  0x18   : > { %s335_s25 = scalar_select %p334_p10, %s1287_s13, 1 }
  0x1a   : > { %s934_s14 = sshll.u32 %s335_s25, 3  ;;  %480 = vperm.xlu0 %1096, %v474_v9   ;;  %s1214_s25 = smov [#allocation4]  }
  0x1b   : > { %s337_s23 = scalar_lea.vmem %s1474_s0, %s934_s14  ;;  %485 = vperm.xlu1 %1097, %v475_v10   ;;  %s333_s14 = scalar_lea.vmem [#allocation4], %s1399_s18 }
  0x1c   : > { %v338_v6 = vld [vmem:[%s337_s23] sm:$0xff]  ;;  %s842_s21 = sshll.u32 %s333_s14, 4  ;;  %s1118_s28 = sshll.u32 %s1214_s25, 4  ;;  %s843_s21 = int_to_ptr.vmem [resolvable:$true] %s842_s21  ;;  %s1119_s28 = int_to_ptr.vmem [resolvable:$false] %s1118_s28 }
  0x1d   : > { %979 = vmatprep.subr.mxu1 %v338_v6  ;;  %s1114_s27 = scalar_lea.vmem %s843_s21, 16  ;;  %s1120_s29 = scalar_lea.vmem %s1119_s28, 32 }
  0x1e   : > { %980 = vmatpush3.msra.mxu1 %v338_v6  ;;  %490 = vperm.xlu0 %1096, %v476_v12   ;;  %p1115_p11 = scmp.ne.s32.totalorder %s843_s21, %s1114_s27  ;;  %p1121_p0 = scmp.lt.s32.totalorder %s843_s21, %s1119_s28 }
  0x1f   : > { %982 = vmatmul.mubr.msk.f32.vlgmr.msra.gmra.mrb[0].mxu1 %vm372_vm0, %v340_v7  ;;  %495 = vperm.xlu1 %1097, %v477_v13   ;;  %p1122_p1 = scmp.lt.s32.totalorder %s1120_s29, %s1114_s27 }
  0x20   : > { %984 = vmatprep.mubr.msk.f32.mxu1 %vm372_vm0, %v341_v8  ;;  %p1116_p12 = pnand %p1115_p11, %p1304_p5 }
  0x21   : > { %p1123_p2 = por %p1122_p1, %p1121_p0 }
  0x22   : > { %603 = vperm.xlu0 %1096, %v600_v14   ;;  %p1117_p13 = pneg %p1116_p12 }
  0x23   : > { %985 = vmatmul.mubr.msk.f32.gmra.mrb[2].mxu1 %vm372_vm0, %v342_v11 }
  0x24   : > { %1020 = vmatprep.mubr.msk.f32.mxu1 %vm498_vm1, %v696_v16  ;;  %p1124_p3 = pnand %p1123_p2, %p1117_p13 }
  0x91   : > { %v355_v17 = vpop.permute.xlu0 %354 }
  0x92   : > { %v365_v18 = vpop.permute.xlu1 %364 }
  0x95   : > { %v360_v19 = vpop.permute.xlu0 %359 }
  0x96   : > { %v370_v24 = vpop.permute.xlu1 %369 }
  0x99   : > { %v481_v53 = vpop.permute.xlu0 %480 }
  0x9a   : > { %v486_v54 = vpop.permute.xlu1 %485 }
  0x9d   : > { %v491_v59 = vpop.permute.xlu0 %490 }
  0x9e   : > { %v496_v60 = vpop.permute.xlu1 %495 }
  0xf2   : > { %v983_v20 = vpop.f32.mrb[0].mxu1 }
  0xf3   : > { %v457_v21 = vadd.f32 %v983_v20, %v360_v19  ;;  %v451_v22 = vpop.f32.mrb[1].mxu1 }
  0xf4   : > { %v452_v23 = vadd.f32 %v451_v22, %v355_v17  ;;  %v347_v22 = vld [vmem:[%s1479_s5] sm:$0xff] }
  0xf5   : > { %1098 = vtanh.f32 %v457_v21 }
  0xf6   : > { %1100 = vtanh.f32 %v452_v23  ;;  %v986_v25 = vpop.f32.mrb[2].mxu1 }
  0xf7   : > { %v467_v26 = vadd.f32 %v986_v25, %v370_v24  ;;  %v461_v27 = vpop.f32.mrb[3].mxu1 }
  0xf8   : > { %v462_v28 = vadd.f32 %v461_v27, %v365_v18 }
  0xf9   : > { %1102 = vtanh.f32 %v467_v26 }
  0xfa   : > { %1104 = vtanh.f32 %v462_v28 }
  0xff   : > { %v1099_v29 = vpop.eup %1098 }
 0x100   : > { %v1101_v30 = vpop.eup %1100  ;;  %v681_v31 = vmul.f32 %v1099_v29, %v1099_v29 }
 0x101   : > { %v1026_v32 = vpack.c.bf16 %v1099_v29, %v1101_v30  ;;  %v680_v33 = vmul.f32 %v1101_v30, %v1101_v30 }
 0x102   : > { %v685_v34 = vsub.f32 1.0, %v681_v31 }
 0x103   : > { %v1103_v35 = vpop.eup %1102  ;;  %1027 = vmatprep.subr.bf16.mxu0 %v1026_v32  ;;  %v684_v36 = vsub.f32 1.0, %v680_v33 }
 0x104   : > { %v1105_v37 = vpop.eup %1104  ;;  %1029 = vmatpush3.bf16.msra.mxu0 %v1026_v32  ;;  %v683_v38 = vmul.f32 %v1103_v35, %v1103_v35 }
 0x105   : > { %v1030_v39 = vpack.c.bf16 %v1103_v35, %v1105_v37  ;;  %v1040_v40 = vpack.c.bf16 %v685_v34, %v684_v36  ;;  %v682_v41 = vmul.f32 %v1105_v37, %v1105_v37 }
 0x106   : > { %v687_v42 = vsub.f32 1.0, %v683_v38 }
 0x107   : > { %1031 = vmatprep.subr.bf16.mxu0 %v1030_v39  ;;  %1041 = vmatprep.subr.bf16.mxu1 %v1040_v40  ;;  %v686_v43 = vsub.f32 1.0, %v682_v41 }
 0x108   : > { %1033 = vmatpush3.bf16.msra.mxu0 %v1030_v39  ;;  %1043 = vmatpush3.bf16.msra.mxu1 %v1040_v40 }
 0x109   : > { %v1044_v45 = vpack.c.bf16 %v687_v42, %v686_v43  ;;  %1034 = vmatprep.subr.bf16.mxu0 %v1211_v51 }
 0x10b   : > { %996 = vmatmul.mubr.msk.f32.vlgmr.msra.gmra.mrb[0].mxu0 %vm498_vm1, %v344_v44  ;;  %1045 = vmatprep.subr.bf16.mxu1 %v1044_v45 }
 0x10c   : > { %1047 = vmatpush3.bf16.msra.mxu1 %v1044_v45  ;;  %998 = vmatprep.mubr.msk.f32.mxu0 %vm498_vm1, %v345_v46 }
 0x10f   : > { %999 = vmatmul.mubr.msk.f32.gmra.mrb[2].mxu0 %vm498_vm1, %v346_v47  ;;  %1021 = vmatmul.mubr.msk.f32.vlgmr.msra.gmra.mrb[4].mxu1 %vm498_vm1, %v697_v48 }
 0x110   : > { %1023 = vmatprep.mubr.msk.f32.mxu1 %vm498_vm1, %v698_v49  ;;  %1009 = vmatprep.mubr.msk.f32.mxu0 %vm1212_vm2, %v1213_v52 }
 0x113   : > { %1024 = vmatmul.mubr.msk.f32.gmra.mrb[6].mxu1 %vm498_vm1, %v699_v50 }
 0x1de   : > { %v997_v55 = vpop.f32.mrb[0].mxu0 }
 0x1df   : > { %v583_v56 = vadd.f32 %v997_v55, %v486_v54  ;;  %v577_v57 = vpop.f32.mrb[1].mxu0 }
 0x1e0   : > { %v578_v58 = vadd.f32 %v577_v57, %v481_v53 }
 0x1e1   : > { %1106 = vtanh.f32 %v583_v56 }
 0x1e2   : > { %1108 = vtanh.f32 %v578_v58  ;;  %v1000_v61 = vpop.f32.mrb[2].mxu0  ;;  %v1022_v62 = vpop.f32.mrb[4].mxu1 }
 0x1e3   : > { %v593_v63 = vadd.f32 %v1000_v61, %v496_v60  ;;  %v587_v0 = vpop.f32.mrb[3].mxu0  ;;  %v778_v1 = vpop.f32.mrb[5].mxu1 }
 0x1e4   : > { %v588_v2 = vadd.f32 %v587_v0, %v491_v59 }
 0x1e5   : > { %1110 = vtanh.f32 %v593_v63 }
 0x1e6   : > { %1112 = vtanh.f32 %v588_v2  ;;  %v1025_v3 = vpop.f32.mrb[6].mxu1 }
 0x1e7   : > { %v788_v4 = vpop.f32.mrb[7].mxu1 }
 0x1eb   : > { %v1107_v5 = vpop.eup %1106 }
 0x1ec   : > { %v1109_v6 = vpop.eup %1108  ;;  %v689_v7 = vmul.f32 %v1107_v5, %v1107_v5 }
 0x1ed   : > { %v1035_v8 = vpack.c.bf16 %v1107_v5, %v1109_v6  ;;  %v688_v9 = vmul.f32 %v1109_v6, %v1109_v6 }
 0x1ee   : > { %v693_v10 = vsub.f32 1.0, %v689_v7 }
 0x1ef   : > { %v1111_v11 = vpop.eup %1110  ;;  %1036 = vmatpush3.bf16.msra.mxu0 %v1035_v8  ;;  %v692_v12 = vsub.f32 1.0, %v688_v9 }
 0x1f0   : > { %v1113_v13 = vpop.eup %1112  ;;  %v798_v14 = vmul.f32 %v1022_v62, %v693_v10  ;;  %1037 = vmatprep.subr.bf16.mxu0 %v1211_v51  ;;  %v691_v15 = vmul.f32 %v1111_v11, %v1111_v11 }
 0x1f1   : > { %v797_v16 = vmul.f32 %v778_v1, %v692_v12  ;;  %v1038_v17 = vpack.c.bf16 %v1111_v11, %v1113_v13  ;;  %v690_v18 = vmul.f32 %v1113_v13, %v1113_v13 }
 0x1f2   : > { %v695_v19 = vsub.f32 1.0, %v691_v15 }
 0x1f3   : > { %v801_v20 = vadd.f32 %v798_v14, %v797_v16  ;;  %1039 = vmatpush3.bf16.msra.mxu0 %v1038_v17  ;;  %v694_v21 = vsub.f32 1.0, %v690_v18 }
 0x1f4   : > { %v800_v23 = vmul.f32 %v1025_v3, %v695_v19 }
 0x1f5   : > { %v799_v24 = vmul.f32 %v788_v4, %v694_v21 }
 0x1f6   : > { %1010 = vmatmul.mubr.msk.f32.vlgmr.msra.gmra.mrb[4].mxu0 %vm498_vm1, %v347_v22 }
 0x1f7   : > { %v802_v25 = vadd.f32 %v801_v20, %v799_v24 }
 0x1f9   : > { %v803_v26 = vadd.f32 %v802_v25, %v800_v23 }
 0x1fb   : > { %v804_v27 = vrot.slane %v803_v26, 4 }
 0x1fd   : > { %v805_v28 = vadd.f32 %v804_v27, %v803_v26 }
 0x1ff   : > { %v806_v29 = vrot.slane %v805_v28, 2 }
 0x201   : > { %v807_v30 = vadd.f32 %v806_v29, %v805_v28 }
 0x203   : > { %v808_v31 = vrot.slane %v807_v30, 1 }
 0x205   : > { %v809_v32 = vadd.f32 %v808_v31, %v807_v30 }
 0x207   : > { %810 = vst [vmem:[%s333_s14] sm:$0x1] %v809_v32 }
 0x208   : > { %1127 = shalt.err (!%p1124_p3)
}
 0x209   : > { %s1128_s16 = scalar_lea.hbm %s1406_s24, 16  ;;  %s1132_s22 = scalar_lea.hbm %s1483_s9, 32 }
 0x20a   : > { %p1129_p4 = scmp.ne.s32.totalorder %s1406_s24, %s1128_s16  ;;  %p1133_p9 = scmp.lt.u32.totalorder %s1406_s24, %s1483_s9 }
 0x20b   : > { %p1134_p10 = scmp.lt.u32.totalorder %s1132_s22, %s1128_s16  ;;  %p1136_p12 = scmp.lt.u32.totalorder %s1128_s16, %s1406_s24 }
 0x20c   : > { %p1130_p7 = pnand %p1129_p4, %p1304_p5 }
 0x20d   : > { %p1135_p11 = por %p1134_p10, %p1133_p9 }
 0x20e   : > { %p1131_p8 = pneg %p1130_p7 }
 0x20f   : > { %p1137_p13 = por %p1136_p12, %p1135_p11 }
 0x211   : > { %p1138_p0 = pnand %p1137_p13, %p1131_p8 }
 0x213   : > { %1141 = shalt.err (!%p1138_p0)
}
 0x214   : > { %1049 = dma.vmem_to_hbm [thread:$0]  (%p1304_p5), %s843_s21, 16, %s1406_s24, %s817_s26   ;;  %v604_v33 = vpop.permute.xlu0 %603 }
 0x215   : > { %s933_s27 = sshll.u32 %s1399_s18, 3  ;;  %s949_s28 = sshll.u32 %s1287_s13, 7 }
 0x216   : > { %s327_s29 = scalar_lea.vmem [#allocation2], %s933_s27  ;;  %s1431_s22 = scalar_lea.hbm %s1482_s8, %s949_s28 }
 0x217   : > { %s829_s14 = sshll.u32 %s327_s29, 4  ;;  %s812_s21 = scalar_lea.sflag [#allocation3], %s1399_s18  ;;  %s1433_s14 = int_to_ptr.vmem [resolvable:$true] %s829_s14 }
 0x218   : > { %s1142_s24 = scalar_lea.vmem %s1433_s14, 128  ;;  %s1215_s13 = smov [#allocation2]  }
 0x219   : > { %p1143_p1 = scmp.ne.s32.totalorder %s1433_s14, %s1142_s24  ;;  %s1146_s26 = sshll.u32 %s1215_s13, 4  ;;  %s1147_s26 = int_to_ptr.vmem [resolvable:$false] %s1146_s26 }
 0x21a   : > { %s1148_s23 = scalar_lea.vmem %s1147_s26, 256  ;;  %p1149_p4 = scmp.lt.s32.totalorder %s1433_s14, %s1147_s26 }
 0x21b   : > { %p1144_p2 = pnand %p1143_p1, %p1304_p5  ;;  %p1150_p7 = scmp.lt.s32.totalorder %s1148_s23, %s1142_s24 }
 0x21d   : > { %p1145_p3 = pneg %p1144_p2  ;;  %p1151_p8 = por %p1150_p7, %p1149_p4 }
 0x21f   : > { %p1152_p9 = pnand %p1151_p8, %p1145_p3 }
 0x2c9   : > { %v675_v34 = vpop.f32.mrb[4].mxu0 }
 0x2ca   : > { %v676_v35 = vadd.f32 %v675_v34, %v604_v33  ;;  %v1011_v36 = vpop.f32.mrb[5].mxu0 }
 0x2cc   : > { %679 = vst [vmem:[%s327_s29] sm:$0xff] %v676_v35 }
 0x2cd   : > { %1155 = shalt.err (!%p1152_p9)
}
 0x2ce   : > { %s1156_s18 = scalar_lea.hbm %s1431_s22, 128  ;;  %s1160_s28 = scalar_lea.hbm %s1482_s8, 256 }
 0x2cf   : > { %p1157_p10 = scmp.ne.s32.totalorder %s1431_s22, %s1156_s18  ;;  %p1161_p13 = scmp.lt.u32.totalorder %s1431_s22, %s1482_s8 }
 0x2d0   : > { %p1162_p0 = scmp.lt.u32.totalorder %s1160_s28, %s1156_s18  ;;  %p1164_p2 = scmp.lt.u32.totalorder %s1156_s18, %s1431_s22 }
 0x2d1   : > { %p1158_p11 = pnand %p1157_p10, %p1304_p5 }
 0x2d2   : > { %p1163_p1 = por %p1162_p0, %p1161_p13 }
 0x2d3   : > { %p1159_p12 = pneg %p1158_p11 }
 0x2d4   : > { %p1165_p3 = por %p1164_p2, %p1163_p1 }
 0x2d6   : > { %p1166_p4 = pnand %p1165_p3, %p1159_p12 }
 0x2d8   : > { %1169 = shalt.err (!%p1166_p4)
}
 0x2d9   : > { %1048 = dma.vmem_to_hbm [thread:$0]  (%p1304_p5), %s1433_s14, 128, %s1431_s22, %s812_s21  }
 0x2da PF: > { %p1059_p7 = scmp.ge.s32.totalorder %s1208_s12, 2  ;;  %s854_s17 = sand.u32 1, %s1196_s30  }
 0x2db   : > { %s855_s24 = scalar_lea.sflag [#allocation3], %s854_s17 }
 0x2dc   : > { %p1053_p8 = pnand %p1059_p7, %p1308_p6 }
 0x2de   : > { %1187 = dma.done.wait (!%p1053_p8), %s855_s24, 128  }
 0x2df   : > { %1189 = vsyncadd (!%p1053_p8), %s855_s24, 4294967168  ;;  %s864_s13 = scalar_lea.sflag [#allocation5], %s854_s17 }
 0x2e0   : > { %1191 = dma.done.wait (!%p1053_p8), %s864_s13, 16  }
 0x2e1   : > { %1193 = vsyncadd (!%p1053_p8), %s864_s13, 4294967280  ;;  %s1487_s19 = sld [smem:[#allocation8_spill]]  ;;  %p23_p5 = scmp.ge.s32.totalorder %s1291_s15, 4  }
 0x2e2   : > { %s1488_s30 = smov %s1200_s10  ;;  %s1489_s10 = smov %s1204_s11 }
 0x2e3   : > { %s1491_s12 = smov %s1291_s15  ;;  %25 = sbr.rel (!%p23_p5) target bundleno = 5 (0x5), region = 104 }
 0x2e7   : > { %s1490_s11 = smov %s1487_s19 }
 0x2ea   :  { %868 = vsyncpa [#allocation3], 1 }
 0x2eb   :  { %870 = vsyncpa [#allocation3 + $0x1], 1 }
 0x2ec   :  { %871 = vsyncpa [#allocation5], 1 }
 0x2ed   :  { %873 = vsyncpa [#allocation5 + $0x1], 1 }

</bundles_post_ra>
